<compile_context>
chip_gen: v6e
topology: v6e:2x2x1
jax: 0.10.0
libtpu: 0.0.40
codegen_flags: <defaults>
</compile_context>

<pallas_src>
import numpy as np

import jax
import jax.numpy as jnp
from jax.experimental import pallas as pl
from jax.experimental.pallas import tpu as pltpu


LANE = 128      # lane width (last dim) for f32/bf16 vregs
SUBLANE = 8     # f32 sublane count (second-to-last dim)
TK = 256        # contraction (in_features) tile for the vision projection


def _round_up(x, m):
    return (x + m - 1) // m * m


_VIS_COMPILER_PARAMS = pltpu.CompilerParams(
    dimension_semantics=("parallel", "arbitrary"))


# -----------------------------------------------------------------------------
# Pallas kernels
# -----------------------------------------------------------------------------
def _vis_proj_kernel(x_ref, w_ref, b_ref, o_ref, acc_ref):
    # K-tiled y = x @ W + b for the stub vision encoders.
    # grid = (2, nk): axis 0 selects {query, ref} weight set ("parallel"),
    # axis 1 walks the contraction dim ("arbitrary").  Weights are (In, Out)
    # bf16 (pre-transposed on host) so the MXU consumes them directly.
    k = pl.program_id(1)

    @pl.when(k == 0)
    def _init():
        acc_ref[...] = jnp.zeros_like(acc_ref)

    acc_ref[...] += jnp.dot(x_ref[...], w_ref[...],
                            preferred_element_type=jnp.float32)

    @pl.when(k == pl.num_programs(1) - 1)
    def _finalize():
        o_ref[...] = acc_ref[...] + b_ref[...]


def _heads_other_kernel(xq_ref, emb_ref, wt_ref, bt_ref,
                        wm_vis_ref, wm_txt_ref, bm_ref, o_ref):
    # Fused head for lang_with != 'sat':
    #   xt  = text_proj(mean_pool(emb))        (1/S folded into wt at init)
    #   xlt = mlp_txt(cat(xq, xt))             (pre-split weight -> 2 dots, no concat)
    bf16 = jnp.bfloat16
    pooled = jnp.sum(emb_ref[...], axis=1)                          # (B, tok_pad) f32
    xt = jnp.dot(pooled.astype(bf16), wt_ref[...],
                 preferred_element_type=jnp.float32) + bt_ref[...]
    o_ref[...] = (jnp.dot(xq_ref[...].astype(bf16), wm_vis_ref[...],
                          preferred_element_type=jnp.float32)
                  + jnp.dot(xt.astype(bf16), wm_txt_ref[...],
                            preferred_element_type=jnp.float32)
                  + bm_ref[...])


def _heads_sat_kernel(xq_ref, xr_ref, wv3_ref, bv3_ref,
                      w1_ref, b1_ref, w2_ref, b2_ref, w3_ref, b3_ref,
                      xq_out_ref, xlt_ref):
    # Fused head for lang_with == 'sat':
    #   xlt = vis_txt_L3(xr)   (L1/L2 are dead in the original source)
    #   xq  = vis_L3(vis_L2(vis_L1(xq)))
    bf16 = jnp.bfloat16
    xlt_ref[...] = jnp.dot(xr_ref[...].astype(bf16), wv3_ref[...],
                           preferred_element_type=jnp.float32) + bv3_ref[...]
    h = jnp.dot(xq_ref[...].astype(bf16), w1_ref[...],
                preferred_element_type=jnp.float32) + b1_ref[...]
    h = jnp.dot(h.astype(bf16), w2_ref[...],
                preferred_element_type=jnp.float32) + b2_ref[...]
    xq_out_ref[...] = jnp.dot(h.astype(bf16), w3_ref[...],
                              preferred_element_type=jnp.float32) + b3_ref[...]


# -----------------------------------------------------------------------------
# pallas_call wrappers
# -----------------------------------------------------------------------------
def _vision_projections(x_stacked, params, cfg):
    # x_stacked: (2, B_pad, k_pad) bf16  ->  (2, B_pad, vis_pad) f32
    b_pad = x_stacked.shape[1]
    k_pad, vis_pad = cfg["k_pad"], cfg["vis_pad"]
    nk = k_pad // TK
    return pl.pallas_call(
        _vis_proj_kernel,
        out_shape=jax.ShapeDtypeStruct((2, b_pad, vis_pad), jnp.float32),
        grid_spec=pltpu.PrefetchScalarGridSpec(
            num_scalar_prefetch=0,
            grid=(2, nk),
            in_specs=[
                pl.BlockSpec(block_shape=(None, b_pad, TK),
                             index_map=lambda which, k: (which, 0, k)),
                pl.BlockSpec(block_shape=(None, TK, vis_pad),
                             index_map=lambda which, k: (which, k, 0)),
                pl.BlockSpec(block_shape=(None, 1, vis_pad),
                             index_map=lambda which, k: (which, 0, 0)),
            ],
            out_specs=pl.BlockSpec(block_shape=(None, b_pad, vis_pad),
                                   index_map=lambda which, k: (which, 0, 0)),
            scratch_shapes=[pltpu.VMEM((b_pad, vis_pad), jnp.float32)],
        ),
        compiler_params=_VIS_COMPILER_PARAMS,
    )(x_stacked, params["vis_w"], params["vis_b"])


def _heads_other(xq_pad, emb_pad, params, cfg):
    b_pad = xq_pad.shape[0]
    return pl.pallas_call(
        _heads_other_kernel,
        out_shape=jax.ShapeDtypeStruct((b_pad, cfg["embed_pad"]), jnp.float32),
    )(xq_pad, emb_pad, params["text_w"], params["text_b"],
      params["mlp_txt_w_vis"], params["mlp_txt_w_txt"], params["mlp_txt_b"])


def _heads_sat(xq_pad, xr_pad, params, cfg):
    b_pad = xq_pad.shape[0]
    out_shape = (jax.ShapeDtypeStruct((b_pad, cfg["embed_pad"]), jnp.float32),
                 jax.ShapeDtypeStruct((b_pad, cfg["embed_pad"]), jnp.float32))
    return pl.pallas_call(_heads_sat_kernel, out_shape=out_shape)(
        xq_pad, xr_pad,
        params["vis_txt_L3_w"], params["vis_txt_L3_b"],
        params["vis_L1_w"], params["vis_L1_b"],
        params["vis_L2_w"], params["vis_L2_b"],
        params["vis_L3_w"], params["vis_L3_b"])


# -----------------------------------------------------------------------------
# Parameter init (pre-transposed, padded, bf16 matmul operands; f32 biases)
# -----------------------------------------------------------------------------
def make_config(*, embed_dim, vis_embed, txt_embed, img_feat, vocab, tok_embed, seq):
    return dict(
        embed_dim=embed_dim, vis_embed=vis_embed, txt_embed=txt_embed,
        img_feat=img_feat, vocab=vocab, tok_embed=tok_embed, seq=seq,
        embed_pad=_round_up(embed_dim, LANE),
        vis_pad=_round_up(vis_embed, LANE),
        txt_pad=_round_up(txt_embed, LANE),
        tok_pad=_round_up(tok_embed, LANE),
        k_pad=_round_up(img_feat, TK),
    )


def _init_linear_padded(key, out_dim, in_dim, out_pad, in_pad, w_scale=1.0):
    # nn.Linear-style init, then store W pre-transposed as (In, Out), zero-padded,
    # bf16 for the MXU; bias stays f32 as a (1, Out_pad) row.
    kw, kb = jax.random.split(key)
    bound = 1.0 / np.sqrt(in_dim)
    w = jax.random.uniform(kw, (out_dim, in_dim), jnp.float32, -bound, bound)
    b = jax.random.uniform(kb, (out_dim,), jnp.float32, -bound, bound)
    wt = jnp.zeros((in_pad, out_pad), jnp.float32).at[:in_dim, :out_dim].set(w.T * w_scale)
    bp = jnp.zeros((1, out_pad), jnp.float32).at[0, :out_dim].set(b)
    return wt.astype(jnp.bfloat16), bp


def _init_mlp_txt(key, embed_dim, vis_embed, txt_embed, vis_pad, txt_pad, embed_pad):
    # mlp_txt: Linear(vis+txt -> embed).  Pre-split into the vis / txt halves so
    # the kernel does two MXU contractions + add with no in-VMEM concat.
    kw, kb = jax.random.split(key)
    in_dim = vis_embed + txt_embed
    bound = 1.0 / np.sqrt(in_dim)
    w = jax.random.uniform(kw, (embed_dim, in_dim), jnp.float32, -bound, bound)
    b = jax.random.uniform(kb, (embed_dim,), jnp.float32, -bound, bound)
    w_vis = jnp.zeros((vis_pad, embed_pad), jnp.float32).at[:vis_embed, :embed_dim].set(
        w[:, :vis_embed].T)
    w_txt = jnp.zeros((txt_pad, embed_pad), jnp.float32).at[:txt_embed, :embed_dim].set(
        w[:, vis_embed:].T)
    bp = jnp.zeros((1, embed_pad), jnp.float32).at[0, :embed_dim].set(b)
    return w_vis.astype(jnp.bfloat16), w_txt.astype(jnp.bfloat16), bp


def init_params(key, cfg):
    keys = jax.random.split(key, 11)
    wq, bq = _init_linear_padded(keys[0], cfg["vis_embed"], cfg["img_feat"],
                                 cfg["vis_pad"], cfg["k_pad"])
    wr, br = _init_linear_padded(keys[1], cfg["vis_embed"], cfg["img_feat"],
                                 cfg["vis_pad"], cfg["k_pad"])
    tok_table = jnp.zeros((cfg["vocab"], cfg["tok_pad"]), jnp.float32)
    tok_table = tok_table.at[:, :cfg["tok_embed"]].set(
        jax.random.normal(keys[2], (cfg["vocab"], cfg["tok_embed"]), jnp.float32) * 0.02)
    # 1/seq mean-pool factor folded into the text projection weight.
    wt, bt = _init_linear_padded(keys[3], cfg["txt_embed"], cfg["tok_embed"],
                                 cfg["txt_pad"], cfg["tok_pad"],
                                 w_scale=1.0 / cfg["seq"])
    wm_vis, wm_txt, bm = _init_mlp_txt(keys[4], cfg["embed_dim"], cfg["vis_embed"],
                                       cfg["txt_embed"], cfg["vis_pad"],
                                       cfg["txt_pad"], cfg["embed_pad"])
    params = {
        "vis_w": jnp.stack([wq, wr]),   # (2, k_pad, vis_pad) bf16  [query, ref]
        "vis_b": jnp.stack([bq, br]),   # (2, 1, vis_pad) f32
        "tok_table": tok_table,         # (vocab, tok_pad) f32
        "text_w": wt, "text_b": bt,
        "mlp_txt_w_vis": wm_vis, "mlp_txt_w_txt": wm_txt, "mlp_txt_b": bm,
    }
    head_names = ("vis_txt_L1", "vis_txt_L2", "vis_txt_L3", "vis_L1", "vis_L2", "vis_L3")
    for name, kk in zip(head_names, keys[5:11]):
        w, b = _init_linear_padded(kk, cfg["embed_dim"], cfg["embed_dim"],
                                   cfg["embed_pad"], cfg["embed_pad"])
        params[name + "_w"] = w
        params[name + "_b"] = b
    return params


# -----------------------------------------------------------------------------
# Forward pass (mirrors CLIP_model.forward)
# -----------------------------------------------------------------------------
def _prepare_inputs(q, r, t, params, cfg):
    # Glue: NCHW flatten, zero-pad batch/features to (8,128)-aligned slabs,
    # token-table gather.  Padding is zeros so padded lanes stay zero downstream.
    B = q.shape[0]
    b_pad = _round_up(B, SUBLANE)
    k, k_pad = cfg["img_feat"], cfg["k_pad"]

    def flat_pad(img):
        x = img.reshape(B, -1)
        return jnp.zeros((b_pad, k_pad), jnp.float32).at[:B, :k].set(x)

    x_stacked = jnp.stack([flat_pad(q), flat_pad(r)], axis=0).astype(jnp.bfloat16)
    emb = jnp.take(params["tok_table"], t, axis=0)            # (B, S, tok_pad)
    emb_pad = jnp.zeros((b_pad, cfg["seq"], cfg["tok_pad"]), jnp.float32).at[:B].set(emb)
    return x_stacked, emb_pad, B


def clip_forward(q, r, t, params, cfg, lang_with="other"):
    assert t.shape[1] == cfg["seq"]
    x_stacked, emb_pad, B = _prepare_inputs(q, r, t, params, cfg)
    xqr = _vision_projections(x_stacked, params, cfg)         # (2, B_pad, vis_pad)
    xq_pad, xr_pad = xqr[0], xqr[1]
    if lang_with == "sat":
        # Text embedding is computed-but-unused in the original 'sat' branch -> skipped.
        xq_out, xlt = _heads_sat(xq_pad, xr_pad, params, cfg)
        return xq_out[:B, :cfg["embed_dim"]], xlt[:B, :cfg["embed_dim"]]
    else:
        xlt = _heads_other(xq_pad, emb_pad, params, cfg)
        return xlt[:B, :cfg["embed_dim"]], xr_pad[:B, :cfg["vis_embed"]]


# -----------------------------------------------------------------------------
# Pure-JAX reference (same bf16-operand / f32-accumulate precision policy)
# -----------------------------------------------------------------------------
def _q32(x):
    return x.astype(jnp.bfloat16).astype(jnp.float32)


def _ref_linear(x, w_bf16, b):
    return jnp.dot(_q32(x), w_bf16.astype(jnp.float32)) + b


def clip_forward_ref(q, r, t, params, cfg, lang_with="other"):
    x_stacked, emb_pad, B = _prepare_inputs(q, r, t, params, cfg)
    xq = _ref_linear(x_stacked[0], params["vis_w"][0], params["vis_b"][0])
    xr = _ref_linear(x_stacked[1], params["vis_w"][1], params["vis_b"][1])
    if lang_with == "sat":
        xlt = _ref_linear(xr, params["vis_txt_L3_w"], params["vis_txt_L3_b"])
        h = _ref_linear(xq, params["vis_L1_w"], params["vis_L1_b"])
        h = _ref_linear(h, params["vis_L2_w"], params["vis_L2_b"])
        xqo = _ref_linear(h, params["vis_L3_w"], params["vis_L3_b"])
        return xqo[:B, :cfg["embed_dim"]], xlt[:B, :cfg["embed_dim"]]
    else:
        pooled = jnp.sum(emb_pad, axis=1)
        xt = _ref_linear(pooled, params["text_w"], params["text_b"])
        xlt = (jnp.dot(_q32(xq), params["mlp_txt_w_vis"].astype(jnp.float32))
               + jnp.dot(_q32(xt), params["mlp_txt_w_txt"].astype(jnp.float32))
               + params["mlp_txt_b"])
        return xlt[:B, :cfg["embed_dim"]], xr[:B, :cfg["vis_embed"]]


# -----------------------------------------------------------------------------
if __name__ == "__main__":
    B, C, H, W = 2, 3, 16, 16
    SEQ, VOCAB, TOK_EMBED = 8, 64, 32
    EMBED_DIM = 32
    VIS_EMBED = 32   # stands in for query.visual_projection.out_features
    TXT_EMBED = 32   # stands in for text.text_projection.out_features

    cfg = make_config(embed_dim=EMBED_DIM, vis_embed=VIS_EMBED, txt_embed=TXT_EMBED,
                      img_feat=C * H * W, vocab=VOCAB, tok_embed=TOK_EMBED, seq=SEQ)

    key = jax.random.PRNGKey(0)
    k_q, k_r, k_t, k_p = jax.random.split(key, 4)
    q = jax.random.normal(k_q, (B, C, H, W), jnp.float32)       # NCHW pixel_values
    r = jax.random.normal(k_r, (B, C, H, W), jnp.float32)       # NCHW pixel_values
    t = jax.random.randint(k_t, (B, SEQ), 0, VOCAB, jnp.int32)  # token ids

    params = init_params(k_p, cfg)

    ok = True
    for branch in ("other", "sat"):
        out = clip_forward(q, r, t, params, cfg, lang_with=branch)
        out = jax.block_until_ready(out)
        ref = clip_forward_ref(q, r, t, params, cfg, lang_with=branch)
        for o, rf in zip(out, ref):
            ok &= (o.shape == rf.shape)
            ok &= bool(jnp.allclose(o, rf, atol=2e-3, rtol=2e-3))

    if ok:
        print("KERNEL_OK")
    else:
        raise SystemExit("mismatch between Pallas kernels and JAX reference")
</pallas_src>

<mosaic_0001>
module attributes {stable_mosaic.version = 11 : i64} {
  func.func @_vis_proj_kernel(%arg0: i32, %arg1: i32, %arg2: memref<1x8x256xbf16, #tpu.memory_space<vmem>>, %arg3: memref<1x256x128xbf16, #tpu.memory_space<vmem>>, %arg4: memref<1x1x128xf32, #tpu.memory_space<vmem>>, %arg5: memref<1x8x128xf32, #tpu.memory_space<vmem>>, %arg6: memref<8x128xf32, #tpu.memory_space<vmem>>) attributes {dimension_semantics = [#tpu.dimension_semantics<parallel>, #tpu.dimension_semantics<arbitrary>], iteration_bounds = array<i64: 2, 3>, scalar_prefetch = 0 : i64, scratch_operands = 1 : i64, tpu.core_type = #tpu.core_type<tc>, window_params = [{transform_indices = @transform_0, window_bounds = array<i64: 1, 8, 256>}, {transform_indices = @transform_1, window_bounds = array<i64: 1, 256, 128>}, {transform_indices = @transform_2, window_bounds = array<i64: 1, 1, 128>}, {transform_indices = @transform_3, window_bounds = array<i64: 1, 8, 128>}]} {
    %c0_i32 = arith.constant 0 : i32
    %0 = arith.cmpi eq, %arg1, %c0_i32 : i32
    %1 = arith.extui %0 : i1 to i32
    %c0_i32_0 = arith.constant 0 : i32
    %2 = arith.cmpi ne, %1, %c0_i32_0 : i32
    scf.if %2 {
      %cst_11 = arith.constant 0.000000e+00 : f32
      %14 = vector.broadcast %cst_11 : f32 to vector<8x128xf32>
      %c0_12 = arith.constant 0 : index
      %c0_13 = arith.constant 0 : index
      %15 = vector.load %arg6[%c0_12, %c0_13] : memref<8x128xf32, #tpu.memory_space<vmem>>, vector<8x128xf32>
      tpu.vector_store %arg6[%c0_12, %c0_13], %14 {strides = array<i32>} : memref<8x128xf32, #tpu.memory_space<vmem>>, vector<8x128xf32>,
    } else {
    }
    %c0 = arith.constant 0 : index
    %c0_1 = arith.constant 0 : index
    %3 = vector.load %arg6[%c0, %c0_1] : memref<8x128xf32, #tpu.memory_space<vmem>>, vector<8x128xf32>
    %c0_2 = arith.constant 0 : index
    %c0_3 = arith.constant 0 : index
    %c0_4 = arith.constant 0 : index
    %4 = vector.load %arg2[%c0_2, %c0_3, %c0_4] : memref<1x8x256xbf16, #tpu.memory_space<vmem>>, vector<1x8x256xbf16>
    %5 = vector.shape_cast %4 : vector<1x8x256xbf16> to vector<8x256xbf16>
    %c0_5 = arith.constant 0 : index
    %c0_6 = arith.constant 0 : index
    %c0_7 = arith.constant 0 : index
    %6 = vector.load %arg3[%c0_5, %c0_6, %c0_7] : memref<1x256x128xbf16, #tpu.memory_space<vmem>>, vector<1x256x128xbf16>
    %7 = vector.shape_cast %6 : vector<1x256x128xbf16> to vector<256x128xbf16>
    %cst = arith.constant dense<0.000000e+00> : vector<8x128xf32>
    %8 = tpu.matmul %5, %7, %cst {dimension_numbers = #tpu.dot_dimension_numbers<[1], [0], [0], [1], [0, 0, 1, 1], [], []>} : vector<8x256xbf16>, vector<256x128xbf16>, vector<8x128xf32> -> vector<8x128xf32>
    %9 = arith.addf %3, %8 : vector<8x128xf32>
    %c0_8 = arith.constant 0 : index
    %c0_9 = arith.constant 0 : index
    %10 = vector.load %arg6[%c0_8, %c0_9] : memref<8x128xf32, #tpu.memory_space<vmem>>, vector<8x128xf32>
    tpu.vector_store %arg6[%c0_8, %c0_9], %9 {strides = array<i32>} : memref<8x128xf32, #tpu.memory_space<vmem>>, vector<8x128xf32>,
    %c2_i32 = arith.constant 2 : i32
    %11 = arith.cmpi eq, %arg1, %c2_i32 : i32
    %12 = arith.extui %11 : i1 to i32
    %c0_i32_10 = arith.constant 0 : i32
    %13 = arith.cmpi ne, %12, %c0_i32_10 : i32
    scf.if %13 {
      %c0_11 = arith.constant 0 : index
      %c0_12 = arith.constant 0 : index
      %14 = vector.load %arg6[%c0_11, %c0_12] : memref<8x128xf32, #tpu.memory_space<vmem>>, vector<8x128xf32>
      %c0_13 = arith.constant 0 : index
      %c0_14 = arith.constant 0 : index
      %c0_15 = arith.constant 0 : index
      %15 = vector.load %arg4[%c0_13, %c0_14, %c0_15] : memref<1x1x128xf32, #tpu.memory_space<vmem>>, vector<1x1x128xf32>
      %16 = vector.shape_cast %15 : vector<1x1x128xf32> to vector<1x128xf32>
      %17 = vector.broadcast %16 : vector<1x128xf32> to vector<8x128xf32>
      %18 = arith.addf %14, %17 : vector<8x128xf32>
      %c0_16 = arith.constant 0 : index
      %c0_17 = arith.constant 0 : index
      %c0_18 = arith.constant 0 : index
      %19 = vector.load %arg5[%c0_16, %c0_17, %c0_18] : memref<1x8x128xf32, #tpu.memory_space<vmem>>, vector<1x8x128xf32>
      %20 = vector.shape_cast %19 : vector<1x8x128xf32> to vector<8x128xf32>
      %21 = vector.shape_cast %18 : vector<8x128xf32> to vector<1x8x128xf32>
      tpu.vector_store %arg5[%c0_16, %c0_17, %c0_18], %21 {strides = array<i32>} : memref<1x8x128xf32, #tpu.memory_space<vmem>>, vector<1x8x128xf32>,
    } else {
    }
    return
  }
  func.func @transform_0(%arg0: i32, %arg1: i32) -> (i32, i32, i32) {
    %c0_i32 = arith.constant 0 : i32
    %c0_i32_0 = arith.constant 0 : i32
    return %arg0, %c0_i32, %arg1 : i32, i32, i32
  }
  func.func @transform_1(%arg0: i32, %arg1: i32) -> (i32, i32, i32) {
    %c0_i32 = arith.constant 0 : i32
    %c0_i32_0 = arith.constant 0 : i32
    return %arg0, %arg1, %c0_i32 : i32, i32, i32
  }
  func.func @transform_2(%arg0: i32, %arg1: i32) -> (i32, i32, i32) {
    %c0_i32 = arith.constant 0 : i32
    %c0_i32_0 = arith.constant 0 : i32
    %c0_i32_1 = arith.constant 0 : i32
    return %arg0, %c0_i32, %c0_i32_0 : i32, i32, i32
  }
  func.func @transform_3(%arg0: i32, %arg1: i32) -> (i32, i32, i32) {
    %c0_i32 = arith.constant 0 : i32
    %c0_i32_0 = arith.constant 0 : i32
    %c0_i32_1 = arith.constant 0 : i32
    return %arg0, %c0_i32, %c0_i32_0 : i32, i32, i32
  }
}

</mosaic_0001>

<bundles_post_ra>
// kernel: tpu_custom_call.1
= control target key start
LH: loop header
LB: loop body
LE: loop exit
PB: predicated region body
PF: predicated region fallthrough
CT: control target
= control target key end

     0   :  { %s1250_s0 = inlined_call_operand.hbm [shape: bf16[2,8,768], index: 0, kind: input, shape index: {}]   ;;  %s1251_s1 = inlined_call_operand.hbm [shape: bf16[2,768,128], index: 1, kind: input, shape index: {}]   ;;  %s1252_s2 = inlined_call_operand.vmem [shape: f32[2,1,128], index: 2, kind: input, shape index: {}]   ;;  %s1253_s3 = inlined_call_operand.hbm [shape: f32[2,8,128], index: 3, kind: output, shape index: {}]  }
   0x1   :  { %1259 = sst [smem:[#allocation19_spill]] %s1250_s0 }
   0x2   :  { %8 = vsyncpa [#allocation4], 0 }
   0x3   :  { %10 = vsyncpa [#allocation4 + $0x1], 0 }
   0x4   :  { %11 = vsyncpa [#allocation7], 0 }
   0x5   :  { %13 = vsyncpa [#allocation7 + $0x1], 0 }
   0x6   :  { %14 = vsyncpa [#allocation5], 0 }
   0x7   :  { %16 = vsyncpa [#allocation5 + $0x1], 0  ;;  %s994_s12 = smov 0   ;;  %s996_s13 = smov 0  }
   0x8   :  { %s998_s14 = smov 0   ;;  %s1000_s15 = smov 0  }
   0x9   :  { %s1002_s16 = smov 0   ;;  %s1004_s17 = smov 0  }
   0xa   :  { %s1006_s18 = smov 0   ;;  %s1008_s19 = smov 0  }
   0xb   :  { %s1010_s20 = smov 0   ;;  %s1012_s21 = smov 0  }
   0xc   :  { %s1014_s22 = smov 0  }
   0xd LB: > { %1260 = sst [smem:[#allocation12_spill]] %s934_s14  ;;  %s595_s23 = sadd.s32 4294967295, %s966_s22   ;;  %s966_s22 = sphi %s1014_s22, %s22_s22   ;;  %s962_s21 = sphi %s1012_s21, %s1280_s21   ;;  %s958_s20 = sphi %s1010_s20, %s1287_s20   ;;  %s954_s19 = sphi %s1008_s19, %s1278_s19   ;;  %s950_s18 = sphi %s1006_s18, %s1286_s18   ;;  %s946_s17 = sphi %s1004_s17, %s1285_s17   ;;  %s942_s16 = sphi %s1002_s16, %s1284_s16   ;;  %s938_s15 = sphi %s1000_s15, %s1283_s15   ;;  %s934_s14 = sphi %s998_s14, %s1275_s14   ;;  %s930_s13 = sphi %s996_s13, %s1282_s13   ;;  %s926_s12 = sphi %s994_s12, %s1281_s12  }
   0xe   : > { %1261 = sst [smem:[#allocation13_spill]] %s946_s17  ;;  %s596_s24 = sadd.s32 4294967294, %s966_s22  }
   0xf   : > { %1262 = sst [smem:[#allocation14_spill]] %s962_s21  ;;  %s31_s25 = sadd.s32 1, %s958_s20 }
  0x10   : > { %s34_s26 = sadd.s32 1, %s962_s21  ;;  %p32_p0 = scmp.ge.s32.totalorder %s31_s25, 3 }
  0x11   : > { %s43_s27 = sadd.s32 1, %s946_s17  ;;  %p50_p1 = scmp.ne.s32.totalorder %s946_s17, %s942_s16 }
  0x12   : > { %p51_p2 = scmp.eq.s32.totalorder %s966_s22, 0  ;;  %s1289_s25 = smov (%p32_p0, %s31_s25), 0 }
  0x13   : > { %1263 = sst [smem:[#allocation15_spill]] %s1289_s25  ;;  %s1291_s26 = smov (!%p32_p0, %s34_s26), %s962_s21 }
  0x14   : > { %s39_s28 = ssub.s32 %s958_s20, %s1289_s25  ;;  %p1060_p3 = por %p51_p2, %p50_p1 }
  0x15   : > { %p36_p4 = scmp.ge.s32.totalorder %s1291_s26, 2  ;;  %p56_p5 = scmp.ne.s32.totalorder %s942_s16, %s938_s15 }
  0x16   : > { %p57_p6 = scmp.eq.s32.totalorder %s595_s23, 0  ;;  %s123_s30 = sadd.s32 1, %s934_s14 }
  0x17   : > { %s1293_s26 = smov (%p36_p4, %s1291_s26), 0  ;;  %p133_p8 = scmp.ne.s32.totalorder %s934_s14, %s930_s13 }
  0x18   : > { %1265 = sst [smem:[#allocation16_spill]] %s1293_s26  ;;  %p1068_p7 = por %p57_p6, %p56_p5 }
  0x19   : > { %s38_s5 = ssub.s32 %s962_s21, %s1293_s26  ;;  %p134_p9 = scmp.eq.s32.totalorder %s595_s23, 5 }
  0x1a   : > { %s40_s6 = sor.u32 %s39_s28, %s38_s5  ;;  %p121_p10 = scmp.eq.s32.totalorder %s38_s5, 0 }
  0x1b   : > { %p41_p11 = scmp.eq.s32.totalorder %s40_s6, 0  ;;  %p1076_p12 = por %p134_p9, %p133_p8 }
  0x1c   : > { %s1081_s8 = scalar_select %p121_p10, %s934_s14, %s123_s30  }
  0x1d   : > { %s1084_s9 = scalar_select %p41_p11, %s946_s17, %s43_s27  }
  0x1e   : > { %1268 = sst [smem:[#allocation17_spill]] %s1081_s8  ;;  %p139_p13 = scmp.ne.s32.totalorder %s930_s13, %s926_s12 }
  0x1f   : > { %1269 = sst [smem:[#allocation18_spill]] %s1084_s9  ;;  %p140_p0 = scmp.eq.s32.totalorder %s596_s24, 5 }
  0x20   : > { %p675_p1 = scmp.lt.s32.totalorder %s966_s22, 6  ;;  %s1094_s11 = sand.u32 1, %s946_s17  }
  0x21   : > { %p1089_p2 = por %p140_p0, %p139_p13  ;;  %s599_s15 = sshll.u32 %s1094_s11, 3 }
  0x22   : > { %s600_s23 = sshll.u32 %s958_s20, 1  ;;  %s656_s28 = smul.u32 6, %s962_s21 }
  0x23   : > { %s164_s5 = scalar_lea.vmem [#allocation3], %s599_s15  ;;  %p1101_p4 = pnand %p675_p1, %p1060_p3 }
  0x24   : > { %s174_s30 = sshll.u32 %s164_s5, 4  ;;  %s170_s24 = sadd.s32 %s656_s28, %s600_s23  ;;  %s175_s30 = int_to_ptr.vmem [resolvable:$true] %s174_s30 }
  0x25   : > { %p605_p5 = scmp.ge.s32.totalorder %s966_s22, 1  ;;  %s601_s6 = sshll.u32 %s170_s24, 6 }
  0x26   : > { %s1272_s0 = sld [smem:[#allocation19_spill]]  ;;  %p208_p6 = scmp.lt.s32.totalorder %s966_s22, 7 }
  0x27   : > { %s161_s17 = scalar_lea.sflag [#allocation4], %s1094_s11  ;;  %p788_p8 = pneg %p1101_p4 }
  0x28   : > { %s799_s15 = scalar_lea.vmem %s175_s30, 128  ;;  %s968_s29 = smov [#allocation3]  }
  0x29   : > { %p800_p9 = scmp.ne.s32.totalorder %s175_s30, %s799_s15  ;;  %s804_s5 = sshll.u32 %s968_s29, 4  ;;  %s805_s5 = int_to_ptr.vmem [resolvable:$false] %s804_s5 }
  0x2a   : > { %s806_s23 = scalar_lea.vmem %s805_s5, 256  ;;  %p807_p11 = scmp.lt.s32.totalorder %s175_s30, %s805_s5 }
  0x2b   : > { %p802_p3 = pnand %p800_p9, %p788_p8  ;;  %p808_p13 = scmp.lt.s32.totalorder %s806_s23, %s799_s15 }
  0x2c   : > { %s172_s9 = scalar_lea.hbm %s1272_s0, %s601_s6 }
  0x2d   : > { %p803_p10 = pneg %p802_p3  ;;  %p809_p0 = por %p808_p13, %p807_p11 }
  0x2f   : > { %p810_p1 = pnand %p809_p0, %p803_p10 }
  0x31   : > { %813 = shalt.err (!%p810_p1)
}
  0x32   : > { %667 = dma.hbm_to_vmem [thread:$0]  (!%p1101_p4), %s172_s9, 128, %s175_s30, %s161_s17  }
  0x33   : > { %p1122_p9 = pnand %p605_p5, %p208_p6  ;;  %s602_s26 = sshll.u32 %s1094_s11, 7 }
  0x34   : > { %s603_s28 = sshll.u32 %s958_s20, 5  ;;  %s657_s24 = smul.u32 96, %s962_s21 }
  0x35   : > { %s185_s6 = scalar_lea.vmem [#allocation6], %s602_s26  ;;  %s182_s14 = scalar_lea.sflag [#allocation7], %s1094_s11 }
  0x36   : > { %s194_s15 = sshll.u32 %s185_s6, 4  ;;  %s191_s29 = sadd.s32 %s657_s24, %s603_s28  ;;  %s195_s15 = int_to_ptr.vmem [resolvable:$true] %s194_s15 }
  0x37   : > { %s604_s5 = sshll.u32 %s191_s29, 6  ;;  %s827_s17 = scalar_lea.vmem %s195_s15, 2048 }
  0x38   : > { %s193_s8 = scalar_lea.hbm %s1251_s1, %s604_s5  ;;  %p828_p3 = scmp.ne.s32.totalorder %s195_s15, %s827_s17 }
  0x39   : > { %s969_s9 = smov [#allocation6]  }
  0x3a   : > { %p830_p5 = pnand %p828_p3, %p788_p8  ;;  %s832_s30 = sshll.u32 %s969_s9, 4  ;;  %s833_s30 = int_to_ptr.vmem [resolvable:$false] %s832_s30 }
  0x3b   : > { %s834_s21 = scalar_lea.vmem %s833_s30, 4096  ;;  %p835_p10 = scmp.lt.s32.totalorder %s195_s15, %s833_s30 }
  0x3c   : > { %p831_p6 = pneg %p830_p5  ;;  %p836_p11 = scmp.lt.s32.totalorder %s834_s21, %s827_s17 }
  0x3e   : > { %p837_p13 = por %p836_p11, %p835_p10 }
  0x40   : > { %p838_p0 = pnand %p837_p13, %p831_p6 }
  0x42   : > { %841 = shalt.err (!%p838_p0)
}
  0x43   : > { %s970_s26 = smov 64   ;;  %s971_s0 = smov 4  }
  0x44   : > { %670 = dma.hbm_to_vmem [thread:$0]  (!%p1101_p4), %s193_s8, 2048, %s195_s15, %s182_s14, %s970_s26, %s970_s26, %s971_s0  }
  0x45   : > { %212 = sbr.rel (%p1122_p9) target bundleno = 354 (0x162), region = 32  ;;  %s214_s11 = sand.u32 (!%p1122_p9), 1, %s942_s16  }
  0x46   : > { %s606_s28 = sshll.u32 (!%p1122_p9), %s214_s11, 3  ;;  %s215_s24 = scalar_lea.sflag (!%p1122_p9), [#allocation4], %s214_s11 }
  0x47   : > { %s1141_s6 = scalar_lea.vmem (!%p1122_p9), [#allocation3], %s606_s28 }
  0x4a   : > { %913 = dma.done.wait (%p1068_p7), %s215_s24, 128  }
  0x4b   : > { %915 = vsyncadd (%p1068_p7), %s215_s24, 4294967168  ;;  %s607_s21 = sshll.u32 %s214_s11, 7  ;;  %s224_s29 = scalar_lea.sflag [#allocation7], %s214_s11 }
  0x4c   : > { %s1147_s27 = scalar_lea.vmem [#allocation6], %s607_s21 }
  0x4d   : > { %917 = dma.done.wait (%p1068_p7), %s224_s29, 2048  }
  0x4e   : > { %919 = vsyncadd (%p1068_p7), %s224_s29, 4294965248  ;;  %s255_s14 = sand.u32 1, %s930_s13   ;;  %p260_p4 = scmp.lt.s32.totalorder %s954_s19, 1 }
  0x4f   : > { %s1157_s8 = sshll.u32 %s255_s14, 3  ;;  %p609_p7 = scmp.ne.s32.totalorder %s950_s18, 0 }
  0x50   : > { %s1160_s25 = scalar_select %p260_p4, %s954_s19, 1 }
  0x51   : > { %s257_s17 = scalar_lea.vmem [#allocation8], %s1157_s8  ;;  %267 = sbr.rel (%p609_p7) target bundleno = 88 (0x58), region = 44 }
  0x52   : > { %s262_s23 = scalar_lea.vmem %s1252_s2, %s1160_s25 }
  0x56   : > { %v972_v0 = vmov 0.0  }
  0x57   : > { %268 = vst [vmem:[#allocation2] sm:$0xff] %v972_v0 }
  0x58 PF: > { %v768_v1 = vld [vmem:[%s1147_s27 + $0x78] sm:$0xff]   ;;  %v770_v3 = vld [vmem:[%s1147_s27 + $0x70] sm:$0xff]   ;;  %v772_v5 = vld [vmem:[%s1147_s27 + $0x68] sm:$0xff]   ;;  %p628_p8 = scmp.ne.s32.totalorder %s950_s18, 2 }
  0x59   : > { %v769_v2 = vld [vmem:[%s1147_s27 + $0x38] sm:$0xff]   ;;  %634 = vmatprep.subr.bf16.mxu0 %v768_v1  ;;  %v771_v4 = vld [vmem:[%s1147_s27 + $0x30] sm:$0xff]   ;;  %v773_v6 = vld [vmem:[%s1147_s27 + $0x28] sm:$0xff]  }
  0x5a   : > { %635 = vmatpush3.bf16.msra.mxu0 %v769_v2  ;;  %v774_v7 = vld [vmem:[%s1147_s27 + $0x60] sm:$0xff]   ;;  %v776_v9 = vld [vmem:[%s1147_s27 + $0x58] sm:$0xff]   ;;  %v778_v11 = vld [vmem:[%s1147_s27 + $0x50] sm:$0xff]  }
  0x5b   : > { %636 = vmatprep.subr.bf16.mxu0 %v770_v3  ;;  %v775_v8 = vld [vmem:[%s1147_s27 + $0x20] sm:$0xff]   ;;  %v777_v10 = vld [vmem:[%s1147_s27 + $0x18] sm:$0xff]   ;;  %v779_v14 = vld [vmem:[%s1147_s27 + $0x10] sm:$0xff]  }
  0x5c   : > { %v270_v12 = vld [vmem:[%s1141_s6] sm:$0xff]  ;;  %v780_v15 = vld [vmem:[%s1147_s27 + $0x48] sm:$0xff]   ;;  %v782_v17 = vld [vmem:[%s1147_s27 + $0x40] sm:$0xff]  }
  0x5d   : > { %v611_v13 = vcombine.high %v270_v12, %v270_v12  ;;  %v781_v16 = vld [vmem:[%s1147_s27 + $0x8] sm:$0xff]   ;;  %v783_v18 = vld [vmem:[%s1147_s27] sm:$0xff]   ;;  %v610_v19 = vcombine.low %v270_v12, %v270_v12 }
  0x5e   : > { %637 = vmatpush3.bf16.msra.mxu0 %v771_v4  ;;  %v269_v21 = vld [vmem:[#allocation2] sm:$0xff] }
  0x5f   : > { %638 = vmatprep.subr.bf16.mxu0 %v772_v5  ;;  %438 = vmatprep.mubr.bf16.mxu0 %v611_v13 }
  0x62   : > { %639 = vmatpush3.bf16.msra.mxu0 %v773_v6 }
  0x63   : > { %640 = vmatprep.subr.bf16.mxu0 %v774_v7 }
  0x66   : > { %641 = vmatpush3.bf16.msra.mxu0 %v775_v8 }
  0x67   : > { %642 = vmatprep.subr.bf16.mxu0 %v776_v9 }
  0x6a   : > { %643 = vmatpush3.bf16.msra.mxu0 %v777_v10 }
  0x6b   : > { %644 = vmatprep.subr.bf16.mxu0 %v778_v11 }
  0x6e   : > { %645 = vmatpush3.bf16.msra.mxu0 %v779_v14 }
  0x6f   : > { %646 = vmatprep.subr.bf16.mxu0 %v780_v15 }
  0x72   : > { %647 = vmatpush3.bf16.msra.mxu0 %v781_v16 }
  0x73   : > { %648 = vmatprep.subr.bf16.mxu0 %v782_v17 }
  0x76   : > { %649 = vmatpush3.bf16.msra.mxu0 %v783_v18 }
  0x79   : > { %439 = vmatmul.mubr.bf16.vlgmr.msra.gmra.mxu0 %v610_v19 }
 0x139   : > { %v650_v20 = vpop.f32.mrf.mxu0 }
 0x13b   : > { %v651_v22 = vpop.f32.mrf.mxu0 }
 0x13c   : > { %v652_v23 = vadd.f32 %v651_v22, %v650_v20  ;;  %451 = sbr.rel (%p628_p8) target bundleno = 331 (0x14b), region = 48 }
 0x13d   : > { %v653_v24 = vpop.f32.mrf.mxu0 }
 0x13e   : > { %v446_v25 = vadd.f32 %v652_v23, %v269_v21 }
 0x13f   : > { %v654_v26 = vpop.f32.mrf.mxu0 }
 0x140   : > { %447 = vst [vmem:[#allocation2] sm:$0xff] %v446_v25 }
 0x141   : > { %v629_v28 = vld [vmem:[%s262_s23] ss:$0 sm:$0xff] }
 0x147   : > { %v452_v27 = vld [vmem:[#allocation2] sm:$0xff] }
 0x148   : > { %v460_v29 = vadd.f32 %v629_v28, %v452_v27 }
 0x14a   : > { %461 = vst [vmem:[%s257_s17] sm:$0xff] %v460_v29 }
 0x14b PF: > { %s631_s30 = sshll.u32 %s954_s19, 7  ;;  %s476_s11 = sshll.u32 %s257_s17, 4  ;;  %s477_s11 = int_to_ptr.vmem [resolvable:$true] %s476_s11 }
 0x14c   : > { %s474_s0 = scalar_lea.hbm %s1253_s3, %s631_s30  ;;  %s463_s28 = scalar_lea.sflag [#allocation5], %s255_s14 }
 0x14d   : > { %s842_s24 = scalar_lea.vmem %s477_s11, 128  ;;  %s973_s6 = smov [#allocation8]  }
 0x14e   : > { %p843_p1 = scmp.ne.s32.totalorder %s477_s11, %s842_s24  ;;  %s846_s21 = sshll.u32 %s973_s6, 4  ;;  %s847_s21 = int_to_ptr.vmem [resolvable:$false] %s846_s21 }
 0x14f   : > { %s848_s29 = scalar_lea.vmem %s847_s21, 256  ;;  %p849_p5 = scmp.lt.s32.totalorder %s477_s11, %s847_s21 }
 0x150   : > { %p844_p9 = pnand %p843_p1, %p1076_p12  ;;  %p850_p6 = scmp.lt.s32.totalorder %s848_s29, %s842_s24 }
 0x152   : > { %p845_p3 = pneg %p844_p9  ;;  %p851_p10 = por %p850_p6, %p849_p5 }
 0x154   : > { %p852_p11 = pnand %p851_p10, %p845_p3 }
 0x156   : > { %855 = shalt.err (!%p852_p11)
}
 0x157   : > { %s856_s19 = scalar_lea.hbm %s474_s0, 128  ;;  %s860_s8 = scalar_lea.hbm %s1253_s3, 256 }
 0x158   : > { %p857_p13 = scmp.ne.s32.totalorder %s474_s0, %s856_s19  ;;  %p861_p7 = scmp.lt.s32.totalorder %s474_s0, %s1253_s3 }
 0x159   : > { %p862_p8 = scmp.lt.s32.totalorder %s860_s8, %s856_s19 }
 0x15a   : > { %p858_p0 = pnand %p857_p13, %p1076_p12 }
 0x15b   : > { %p863_p1 = por %p862_p8, %p861_p7 }
 0x15c   : > { %p859_p4 = pneg %p858_p0 }
 0x15e   : > { %p864_p9 = pnand %p863_p1, %p859_p4 }
 0x160   : > { %867 = shalt.err (!%p864_p9)
}
 0x161   : > { %662 = dma.vmem_to_hbm [thread:$0]  (%p1076_p12), %s477_s11, 128, %s474_s0, %s463_s28  }
 0x162 PF: > { %p676_p3 = scmp.ge.s32.totalorder %s966_s22, 2  ;;  %s488_s5 = sand.u32 1, %s926_s12  }
 0x163   : > { %s489_s23 = scalar_lea.sflag [#allocation5], %s488_s5 }
 0x164   : > { %p672_p5 = pnand %p676_p3, %p1089_p2 }
 0x166   : > { %p673_p6 = pneg %p672_p5 }
 0x168   : > { %921 = dma.done.wait (%p673_p6), %s489_s23, 128  }
 0x169   : > { %923 = vsyncadd (%p673_p6), %s489_s23, 4294967168  ;;  %s22_s22 = sadd.s32 1, %s966_s22   ;;  %s1274_s17 = sld [smem:[#allocation12_spill]] }
 0x16a   : > { %p19_p10 = scmp.ge.s32.totalorder %s22_s22, 8   ;;  %s1275_s14 = sld [smem:[#allocation17_spill]] }
 0x16b   : > { %s1276_s7 = sld [smem:[#allocation13_spill]]  ;;  %s1281_s12 = smov %s930_s13 }
 0x16c   : > { %s1277_s4 = sld [smem:[#allocation18_spill]]  ;;  %s1283_s15 = smov %s942_s16 }
 0x16d   : > { %s1278_s19 = sld [smem:[#allocation14_spill]]  ;;  %s1286_s18 = smov %s958_s20 }
 0x16e   : > { %s1279_s9 = sld [smem:[#allocation15_spill]] }
 0x16f   : > { %s1280_s21 = sld [smem:[#allocation16_spill]]  ;;  %s1282_s13 = smov %s1274_s17 }
 0x170   :  { %21 = sbr.rel (!%p19_p10) target bundleno = 13 (0xd), region = 101 }
 0x171   : > { %s1284_s16 = smov %s1276_s7 }
 0x172   : > { %s1285_s17 = smov %s1277_s4 }
 0x174   : > { %s1287_s20 = smov %s1279_s9 }
 0x175   :  { %494 = vsyncpa [#allocation4], 1 }
 0x176   :  { %496 = vsyncpa [#allocation4 + $0x1], 1 }
 0x177   :  { %497 = vsyncpa [#allocation7], 1 }
 0x178   :  { %499 = vsyncpa [#allocation7 + $0x1], 1 }
 0x179   :  { %500 = vsyncpa [#allocation5], 1 }
 0x17a   :  { %502 = vsyncpa [#allocation5 + $0x1], 1 }

</bundles_post_ra>
